<compile_context>
chip_gen: v6e
topology: v6e:2x2x1
jax: 0.10.0
libtpu: 0.0.40
codegen_flags: <defaults>
</compile_context>

<pallas_src>
import math

import jax
import jax.numpy as jnp
from jax.experimental import pallas as pl
from jax.experimental.pallas import tpu as pltpu


# --------------------------------------------------------------------------
# Kernel: projection + tanh + v-score over flattened (L*B, H) rows.
# --------------------------------------------------------------------------
def _score_kernel(enc_ref, hb_ref, we_ref, v_ref, s_ref):
    # enc_ref: (TILE_M, H) bf16 streamed encoder rows; row r ↔ (l = r//B, b = r%B)
    # hb_ref:  (TILE_M, H) bf16 constant: hidden @ Wh^T + bias, repeated every B rows
    # we_ref:  (H, H)      bf16 constant: encoder half of the Linear weight, (in, out)
    # v_ref:   (1, H)      bf16 constant: scoring vector as a row
    # s_ref:   (TILE_M, 1) f32 raw attention scores
    proj = jnp.dot(enc_ref[...], we_ref[...],
                   preferred_element_type=jnp.float32)          # MXU, bf16 in / f32 acc
    pre = proj + hb_ref[...].astype(jnp.float32)                 # f32 VPU add
    energy = jnp.tanh(pre.astype(jnp.bfloat16))                  # bf16 EUP (v6e/v7x native)
    # v-reduction on VPU + XLU (lane reduce) instead of an N=1 MXU pass.
    prod = (energy * v_ref[...]).astype(jnp.float32)
    s_ref[...] = jnp.sum(prod, axis=-1, keepdims=True).astype(s_ref.dtype)


def _pick_tile_l(L, B, H, *, elem_bytes=2, tile_budget_bytes=3 << 20):
    """Rows per grid step = TILE_L * B.

    Constraints / preferences:
      * (TILE_L*B) % 8 == 0 for sublane-aligned blocks (a ragged *last* tile is
        handled by the pl.cdiv grid, so L need not be divisible by TILE_L),
      * encoder tile (TILE_L*B, H) stays within ~tile_budget_bytes per buffer
        (multi-MiB tiles sit on the ~85% HBM-roofline plateau and are safe for
        v7x's 64 MiB VMEM),
      * >= 2 grid steps whenever alignment permits, so the "parallel" axis can
        be split across the two v7x TensorCores.
    """
    step = 8 // math.gcd(B, 8)                 # smallest TILE_L making TILE_M % 8 == 0
    budget_rows = max(step * B, tile_budget_bytes // (elem_bytes * H))
    tile_l = max(step, (budget_rows // B) // step * step)
    if tile_l < L:
        return tile_l                          # budget forces multiple tiles
    # One tile would fit; prefer two aligned tiles for megacore.
    half_l = -(-((L + 1) // 2) // step) * step
    if half_l < L:
        return half_l
    return L                                   # tiny problem: one full-array tile


def luong_attn_concat(hidden, encoder_outputs, attn_weight, attn_bias, v,
                      compute_dtype=jnp.bfloat16):
    """hidden: (1,B,H), encoder_outputs: (L,B,H), attn_weight: (H,2H),
    attn_bias: (H,), v: (H,).  Returns (B, 1, L) softmax attention weights."""
    _, B, H = hidden.shape
    L = encoder_outputs.shape[0]
    f32 = jnp.float32

    # Split the Linear's 2H input: first H columns act on hidden, last H on the
    # encoder output.  Pre-transpose to (in, out) for row-major matmuls.
    wh_t = attn_weight[:, :H].T.astype(f32)                      # (H, H)
    we_t = attn_weight[:, H:].T.astype(compute_dtype)            # (H, H) streamed weight

    # Hoisted hidden projection + bias: ONE (B,H)@(H,H) f32 matmul for all rows.
    hb = hidden[0].astype(f32) @ wh_t + attn_bias[None, :].astype(f32)   # (B, H)

    # Free contiguous view of the time-major encoder: no HBM transpose.
    # Row r of enc_2d is (l = r // B, b = r % B).  bf16 halves the HBM stream.
    enc_2d = encoder_outputs.reshape(L * B, H).astype(compute_dtype)

    itemsize = jnp.dtype(compute_dtype).itemsize
    TILE_L = _pick_tile_l(L, B, H, elem_bytes=itemsize)
    TILE_M = TILE_L * B
    n_tiles = pl.cdiv(L, TILE_L)
    # Every grid step starts at row index i*TILE_M, a multiple of B, so the
    # per-B-row hidden pattern inside hb_tile stays aligned even for a ragged
    # last tile.  (Correctness invariant called out by the review.)
    assert TILE_M % B == 0

    # Hidden term for one tile: the per-row pattern repeats every B rows and
    # every tile starts at a multiple of B, so a single resident (TILE_M, H)
    # bf16 tile (constant index_map → DMA'd once) serves all grid steps.
    hb_tile = jnp.tile(hb, (TILE_L, 1)).astype(compute_dtype)    # (TILE_M, H)
    v_row = v.reshape(1, H).astype(compute_dtype)                # (1, H)

    # Explicit VMEM budget: stream + constants are all (at most) double-buffered.
    enc_tile_bytes = TILE_M * H * itemsize
    const_bytes = TILE_M * H * itemsize + H * H * itemsize + H * itemsize
    out_tile_bytes = TILE_M * 4
    needed = 2 * (enc_tile_bytes + const_bytes + out_tile_bytes)
    vmem_limit = int(min(max(2 * needed + (2 << 20), 20 << 20), 48 << 20))

    scores = pl.pallas_call(
        _score_kernel,
        out_shape=jax.ShapeDtypeStruct((L * B, 1), jnp.float32),
        grid=(n_tiles,),
        in_specs=[
            pl.BlockSpec((TILE_M, H), lambda i: (i, 0)),   # streamed encoder rows (bf16)
            pl.BlockSpec((TILE_M, H), lambda i: (0, 0)),   # constant: hidden term (bf16)
            pl.BlockSpec((H, H),      lambda i: (0, 0)),   # constant: We^T (bf16)
            pl.BlockSpec((1, H),      lambda i: (0, 0)),   # constant: v row (bf16)
        ],
        out_specs=pl.BlockSpec((TILE_M, 1), lambda i: (i, 0)),
        compiler_params=pltpu.CompilerParams(
            dimension_semantics=("parallel",),
            vmem_limit_bytes=vmem_limit),
    )(enc_2d, hb_tile, we_t, v_row)

    # (L*B, 1) -> (L, B) -> (B, L) touches only L*B scalars (H× smaller than the
    # encoder stream); transpose + softmax fuse fine in plain XLA — a dedicated
    # Pallas launch here was pure fixed overhead (review item).
    scores_bl = scores.reshape(L, B).T                           # (B, L) f32
    probs = jax.nn.softmax(scores_bl, axis=1)
    return probs[:, None, :]                                     # (B, 1, L)


def luong_attn_concat_ref(hidden, encoder_outputs, attn_weight, attn_bias, v):
    """Pure-JAX f32 reference matching the PyTorch module exactly."""
    L = encoder_outputs.shape[0]
    hid_exp = jnp.broadcast_to(hidden, (L,) + hidden.shape[1:])   # (L, B, H)
    cat = jnp.concatenate([hid_exp, encoder_outputs], axis=2)     # (L, B, 2H)
    energy = jnp.tanh(jnp.einsum("lbi,oi->lbo", cat, attn_weight) + attn_bias)
    scores = jnp.sum(v * energy, axis=2)                          # (L, B)
    return jax.nn.softmax(scores.T, axis=1)[:, None, :]           # (B, 1, L)


if __name__ == "__main__":
    B, L, H = 2, 8, 32
    key = jax.random.PRNGKey(0)
    k1, k2, k3, k4, k5 = jax.random.split(key, 5)

    hidden = jax.random.normal(k1, (1, B, H), dtype=jnp.float32)
    encoder_outputs = jax.random.normal(k2, (L, B, H), dtype=jnp.float32)

    # Deterministic parameter init (shapes from nn.Linear(2H, H) and v).
    attn_weight = jax.random.normal(k3, (H, 2 * H), dtype=jnp.float32) * 0.1
    attn_bias = jax.random.normal(k4, (H,), dtype=jnp.float32) * 0.1
    v = jax.random.normal(k5, (H,), dtype=jnp.float32) * 0.1

    fn = jax.jit(luong_attn_concat)
    out = jax.block_until_ready(fn(hidden, encoder_outputs, attn_weight, attn_bias, v))

    ref = luong_attn_concat_ref(hidden, encoder_outputs, attn_weight, attn_bias, v)

    assert out.shape == (B, 1, L), out.shape
    # bf16 streamed operands (f32 accumulation) vs. an all-f32 reference:
    # tolerance relaxed per the performance review.
    max_err = float(jnp.max(jnp.abs(out - ref)))
    assert jnp.allclose(out, ref, atol=2e-2, rtol=2e-2), max_err
    # Softmax rows are computed in f32 and must sum to 1 tightly.
    assert jnp.allclose(jnp.sum(out, axis=-1), 1.0, atol=1e-5)

    print("KERNEL_OK")
</pallas_src>

<mosaic_0001>
module attributes {stable_mosaic.version = 11 : i64} {
  func.func @_score_kernel(%arg0: i32, %arg1: memref<8x32xbf16, #tpu.memory_space<vmem>>, %arg2: memref<8x32xbf16, #tpu.memory_space<vmem>>, %arg3: memref<32x32xbf16, #tpu.memory_space<vmem>>, %arg4: memref<1x32xbf16, #tpu.memory_space<vmem>>, %arg5: memref<8x1xf32, #tpu.memory_space<vmem>>) attributes {dimension_semantics = [#tpu.dimension_semantics<parallel>], iteration_bounds = array<i64: 2>, scalar_prefetch = 0 : i64, scratch_operands = 0 : i64, tpu.core_type = #tpu.core_type<tc>, window_params = [{transform_indices = @transform_0, window_bounds = array<i64: 8, 32>}, {pipeline_mode = #tpu.pipeline_mode<synchronous>, transform_indices = @transform_1, window_bounds = array<i64: 8, 32>}, {pipeline_mode = #tpu.pipeline_mode<synchronous>, transform_indices = @transform_2, window_bounds = array<i64: 32, 32>}, {pipeline_mode = #tpu.pipeline_mode<synchronous>, transform_indices = @transform_3, window_bounds = array<i64: 1, 32>}, {transform_indices = @transform_4, window_bounds = array<i64: 8, 1>}]} {
    %c0 = arith.constant 0 : index
    %c0_0 = arith.constant 0 : index
    %0 = vector.load %arg1[%c0, %c0_0] : memref<8x32xbf16, #tpu.memory_space<vmem>>, vector<8x32xbf16>
    %c0_1 = arith.constant 0 : index
    %c0_2 = arith.constant 0 : index
    %1 = vector.load %arg3[%c0_1, %c0_2] : memref<32x32xbf16, #tpu.memory_space<vmem>>, vector<32x32xbf16>
    %cst = arith.constant dense<0.000000e+00> : vector<8x32xf32>
    %2 = tpu.matmul %0, %1, %cst {dimension_numbers = #tpu.dot_dimension_numbers<[1], [0], [0], [1], [0, 0, 1, 1], [], []>} : vector<8x32xbf16>, vector<32x32xbf16>, vector<8x32xf32> -> vector<8x32xf32>
    %c0_3 = arith.constant 0 : index
    %c0_4 = arith.constant 0 : index
    %3 = vector.load %arg2[%c0_3, %c0_4] : memref<8x32xbf16, #tpu.memory_space<vmem>>, vector<8x32xbf16>
    %4 = arith.extf %3 : vector<8x32xbf16> to vector<8x32xf32>
    %5 = arith.addf %2, %4 : vector<8x32xf32>
    %6 = arith.truncf %5 : vector<8x32xf32> to vector<8x32xbf16>
    %7 = math.tanh %6 : vector<8x32xbf16>
    %c0_5 = arith.constant 0 : index
    %c0_6 = arith.constant 0 : index
    %8 = vector.load %arg4[%c0_5, %c0_6] : memref<1x32xbf16, #tpu.memory_space<vmem>>, vector<1x32xbf16>
    %9 = vector.broadcast %8 : vector<1x32xbf16> to vector<8x32xbf16>
    %10 = arith.mulf %7, %9 : vector<8x32xbf16>
    %11 = arith.extf %10 : vector<8x32xbf16> to vector<8x32xf32>
    %cst_7 = arith.constant dense<0.000000e+00> : vector<8xf32>
    %12 = vector.multi_reduction <add>, %11, %cst_7 [1] : vector<8x32xf32> to vector<8xf32>
    %13 = vector.shape_cast %12 : vector<8xf32> to vector<8x1xf32>
    %c0_8 = arith.constant 0 : index
    %c0_9 = arith.constant 0 : index
    %14 = vector.load %arg5[%c0_8, %c0_9] : memref<8x1xf32, #tpu.memory_space<vmem>>, vector<8x1xf32>
    tpu.vector_store %arg5[%c0_8, %c0_9], %13 {strides = array<i32>} : memref<8x1xf32, #tpu.memory_space<vmem>>, vector<8x1xf32>,
    return
  }
  func.func @transform_0(%arg0: i32) -> (i32, i32) {
    %c0_i32 = arith.constant 0 : i32
    %c0_i32_0 = arith.constant 0 : i32
    return %arg0, %c0_i32 : i32, i32
  }
  func.func @transform_1(%arg0: i32) -> (i32, i32) {
    %c0_i32 = arith.constant 0 : i32
    %c0_i32_0 = arith.constant 0 : i32
    %c0_i32_1 = arith.constant 0 : i32
    return %c0_i32, %c0_i32_0 : i32, i32
  }
  func.func @transform_2(%arg0: i32) -> (i32, i32) {
    %c0_i32 = arith.constant 0 : i32
    %c0_i32_0 = arith.constant 0 : i32
    %c0_i32_1 = arith.constant 0 : i32
    return %c0_i32, %c0_i32_0 : i32, i32
  }
  func.func @transform_3(%arg0: i32) -> (i32, i32) {
    %c0_i32 = arith.constant 0 : i32
    %c0_i32_0 = arith.constant 0 : i32
    %c0_i32_1 = arith.constant 0 : i32
    return %c0_i32, %c0_i32_0 : i32, i32
  }
  func.func @transform_4(%arg0: i32) -> (i32, i32) {
    %c0_i32 = arith.constant 0 : i32
    %c0_i32_0 = arith.constant 0 : i32
    return %arg0, %c0_i32 : i32, i32
  }
}

</mosaic_0001>

<bundles_post_ra>
// kernel: luong_attn_concat.1
= control target key start
LH: loop header
LB: loop body
LE: loop exit
PB: predicated region body
PF: predicated region fallthrough
CT: control target
= control target key end

     0   :  { %s399_s15 = smov 0   ;;  %s434_s0 = inlined_call_operand.vmem [shape: bf16[16,32], index: 0, kind: input, shape index: {}]   ;;  %s435_s1 = inlined_call_operand.vmem [shape: bf16[8,32], index: 1, kind: input, shape index: {}]   ;;  %s436_s2 = inlined_call_operand.vmem [shape: bf16[32,32], index: 2, kind: input, shape index: {}]   ;;  %s437_s3 = inlined_call_operand.vmem [shape: bf16[1,32], index: 3, kind: input, shape index: {}]   ;;  %s438_s4 = inlined_call_operand.vmem [shape: f32[16,1], index: 4, kind: output, shape index: {}]  }
   0x1 LB: > { %s327_s16 = sadd.s32 4294967295, %s370_s15   ;;  %p331_p0 = scmp.ge.s32.totalorder %s370_s15, 1  ;;  %s370_s15 = sphi %s399_s15, %s14_s15  }
   0x2   : > { %p161_p1 = scmp.lt.s32.totalorder %s370_s15, 3 }
   0x4   : > { %p162_p2 = pnand %p331_p0, %p161_p1 }
   0x5   : > { %p185_p3 = scmp.lt.s32.totalorder (!%p162_p2), %s327_s16, 1 }
   0x6   : > { %165 = sbr.rel (%p162_p2) target bundleno = 376 (0x178), region = 36 }
   0xb   : > { %v360_v0 = vld [vmem:[%s436_s2 + $0x8] sm:$0xff]   ;;  %v372_v1 = vmov 0.0   ;;  %v361_v2 = vld [vmem:[%s436_s2] sm:$0xff]   ;;  %vm373_vm0 = vmmov 0   ;;  %s440_s16 = smov (!%p185_p3, %s327_s16), 1  ;;  %vm213_vm1 = vcmask 261120   ;;  %v263_v11 = vlaneseq }
   0xc   : > { %342 = vmatprep.subr.bf16.mxu0 %v372_v1  ;;  %346 = vmatprep.mubr.msk.bf16.mxu0 %vm373_vm0, %v372_v1  ;;  %s332_s21 = sshll.u32 %s440_s16, 2  ;;  %v199_v4 = vld [vmem:[%s435_s1] sm:$0xf]  ;;  %s333_s29 = sshll.u32 %s440_s16, 3  ;;  %vm272_vm2 = vcmask 7168  }
   0xd   : > { %343 = vmatpush3.bf16.msra.mxu0 %v360_v0  ;;  %s188_s24 = scalar_lea.vmem %s434_s0, %s332_s21  ;;  %v200_v5 = vunpack.c.l.bf16 %v199_v4  ;;  %v264_v13 = vshrl.u32 %v263_v11, 7  ;;  %v259_v14 = vld [vmem:[%s437_s3] sm:$0x1]  ;;  %s192_s6 = scalar_lea.vmem %s438_s4, %s333_s29 }
   0xe   : > { %344 = vmatprep.subr.bf16.mxu0 %v372_v1  ;;  %v194_v3 = vld [vmem:[%s188_s24] sm:$0xf]  ;;  %v261_v15 = vpack.i.b16 %v259_v14, %v259_v14 }
   0xf   : > { %v265_v16 = vsub.s32 0, %v264_v13 }
  0x11   : > { %345 = vmatpush3.bf16.msra.mxu0 %v361_v2  ;;  %v266_v17 = vrot.slane %v261_v15, %v265_v16 }
  0x14   : > { %347 = vmatmul.mubr.msk.bf16.vlgmr.msra.gmra.mxu0 %vm213_vm1, %v194_v3 }
  0xd4   : > { %v251_v6 = vpop.f32.mrf.mxu0 }
  0xd5   : > { %v252_v7 = vadd.f32 %v251_v6, %v200_v5 }
  0xd6   : > { %v348_v8 = vpop.f32.mrf.mxu0 }
  0xd7   : > { %v257_v9 = vpack.c.bf16 %v252_v7, %v252_v7 }
  0xd8   : > { %v254_v10 = vpop.f32.mrf.mxu0 }
  0xd9   : > { %362 = vtanh.bf16 %v257_v9 }
  0xda   : > { %v349_v12 = vpop.f32.mrf.mxu0 }
  0xe7   : > { %v363_v18 = vpop.eup %362 }
  0xe8   : > { %v267_v19 = vmul.bf16 %v363_v18, %v266_v17 }
  0xea   : > { %v268_v20 = vunpack.c.l.bf16 %v267_v19 }
  0xec   : > { %v269_v21 = vsel %vm213_vm1, %v268_v20, 0.0 }
  0xed   : > { %270 = vadd.xlane.f32.xlu0 %v269_v21 }
 0x176   : > { %v271_v22 = vpop.xlane.xlu0 %270 }
 0x177   : > { %273 = vst.msk [vmem:[%s192_s6] sm:$0xff] %vm272_vm2, %v271_v22 }
 0x178 PF: > { %s14_s15 = sadd.s32 1, %s370_s15  }
 0x179   : > { %p11_p4 = scmp.ge.s32.totalorder %s14_s15, 4  }
 0x17b   :  { %13 = sbr.rel (!%p11_p4) target bundleno = 1 (0x1), region = 66 }

</bundles_post_ra>
